<compile_context>
chip_gen: v6e
topology: v6e:2x2x1
jax: 0.10.0
libtpu: 0.0.40
codegen_flags: <defaults>
</compile_context>

<pallas_src>
import functools
import jax
import jax.numpy as jnp
from jax.experimental import pallas as pl
from jax.experimental.pallas import tpu as pltpu


OUT_ROWS = 6  # packed rows: [reg(4) | fused_score(1) | depth(1)]


def _roi_head_kernel(x_ref, w_ref, b_ref, out_ref, *, C, num_classes):
    """Process one (C, tile_s) column block of the feature map.

    x_ref   : (C, T)        features, channels on sublanes, spatial on lanes
    w_ref   : (C+Ht, C)     [stem(C) | heads(Ht)] fused weights, (out, in)
    b_ref   : (C+Ht, 1)     fused biases (f32)
    out_ref : (6, T)        packed [reg(4) | max_score(1) | depth(1)]
    Head row order: [reg(4, sign-folded) | depth(1) | ctr(1) | cls(nc)].
    """
    nc = num_classes
    x = x_ref[...]                                              # (C, T) native dtype

    w_stem = w_ref[0:C, :]                                      # (C, C)
    w_heads = w_ref[C:, :]                                      # (Ht, C)
    b_stem = b_ref[0:C, :]                                      # (C, 1) f32
    b_heads = b_ref[C:, :]                                      # (Ht, 1) f32

    # shared stem: 1x1 conv == channel matmul, ReLU (spatial stays on lanes)
    y = jnp.dot(w_stem, x, preferred_element_type=jnp.float32)  # (C, T) f32
    y = jnp.maximum(y + b_stem, 0.0)
    y = y.astype(x.dtype)                                       # keep MXU native on bf16

    # single fused head matmul, rows = [reg(4) | dep(1) | ctr(1) | cls(nc)]
    h = jnp.dot(w_heads, y, preferred_element_type=jnp.float32)
    h = h + b_heads                                             # (Ht, T) f32

    reg = h[0:4, :]                                             # (4, T) = (-l,-t,r,b)
    dep = h[4:5, :]                                             # (1, T)
    ctr = h[5:6, :]                                             # (1, T)
    cls = h[6:6 + nc, :]                                        # (nc, T)

    # sigmoid is monotonic: reduce class logits first, single sigmoid (EUP)
    max_cls = jnp.max(cls, axis=0, keepdims=True)               # (1, T)
    max_score = jax.nn.sigmoid(max_cls) * jax.nn.sigmoid(ctr)   # (1, T)
    depth = jnp.maximum(dep, 0.0)                               # (1, T)

    # one lane-dense full-block store
    out_ref[...] = jnp.concatenate([reg, max_score, depth], axis=0)


def _cdiv(a, b):
    return (a + b - 1) // b


def _round_up(a, b):
    return _cdiv(a, b) * b


def _vmem_capacity_bytes():
    try:
        cap = getattr(pltpu.get_tpu_info(), "vmem_capacity_bytes", None)
        if cap:
            return int(cap)
    except Exception:
        pass
    return 64 << 20  # conservative fallback (v7x physical)


def _is_multi_tc_part():
    try:
        kind = jax.devices()[0].device_kind.lower()
        return "v7" in kind
    except Exception:
        return False


def _pick_tile_s(S, B, C, Ht, in_itemsize, vmem_cap, target=4096, multi_tc=False):
    """Lane-dense tile width: multiple of 128, VMEM-aware, TC-count aware."""
    tile = min(target, _round_up(S, 128))
    tile = max(128, _round_up(tile, 128))

    def need(t):  # double-buffered working set
        return (2 * C * t * in_itemsize            # x input buffers
                + 2 * OUT_ROWS * t * 4             # packed output buffers
                + 2 * (C + Ht) * (C + 1) * 4)      # fused weights + biases

    budget = vmem_cap // 2                          # leave half of VMEM as headroom
    while tile > 128 and need(tile) > budget:
        tile -= 128

    if multi_tc:
        # keep >= 2 grid steps so both TensorCores get work on v7x
        while B * _cdiv(S, tile) < 2 and tile > 128:
            tile = max(128, _round_up(tile // 2, 128))
    return tile, need(tile)


def img_roi_head_pallas(x_bcs, params, num_classes, *, target_tile_s=4096):
    """x_bcs: (B, C, S) feature map (channels-first, spatial flattened).

    Returns a packed slab of shape (B, 6, S):
      rows 0:4 = sign-folded bbox reg, row 4 = fused 2D score, row 5 = depth.
    """
    B, C, S = x_bcs.shape
    nc = num_classes
    Ht = nc + 6

    vmem_cap = _vmem_capacity_bytes()
    in_item = jnp.dtype(x_bcs.dtype).itemsize
    tile_s, need = _pick_tile_s(S, B, C, Ht, in_item, vmem_cap,
                                target=target_tile_s, multi_tc=_is_multi_tc_part())
    vmem_limit = int(min(vmem_cap * 3 // 4, max(2 * need + (4 << 20), 32 << 20)))

    # --- fuse stem + all four heads into one weight / one bias stream.
    # Head row order: [reg(4, distance2bbox signs folded) | dep | ctr | cls].
    signs = jnp.array([-1.0, -1.0, 1.0, 1.0], jnp.float32)      # x1,y1,x2,y2
    w_heads = jnp.concatenate(
        [params["w_reg"] * signs[None, :], params["w_dep"],
         params["w_ctr"], params["w_cls"]], axis=1)              # (C, Ht)
    b_heads = jnp.concatenate(
        [params["b_reg"] * signs[None, :], params["b_dep"],
         params["b_ctr"], params["b_cls"]], axis=1)              # (1, Ht)

    w_all = jnp.concatenate([params["w_stem"].T, w_heads.T], axis=0)  # (C+Ht, C)
    b_all = jnp.concatenate([params["b_stem"].T, b_heads.T], axis=0)  # (C+Ht, 1)
    w_all = w_all.astype(x_bcs.dtype)            # MXU native dtype (bf16 or f32)
    b_all = b_all.astype(jnp.float32)            # epilogue stays f32

    grid = (B, _cdiv(S, tile_s))                 # ragged last tile handled by Pallas
    grid_spec = pltpu.PrefetchScalarGridSpec(
        num_scalar_prefetch=0,
        grid=grid,
        in_specs=[
            pl.BlockSpec((None, C, tile_s), lambda b, s: (b, 0, s)),   # x block
            pl.BlockSpec((C + Ht, C), lambda b, s: (0, 0)),            # fused weights
            pl.BlockSpec((C + Ht, 1), lambda b, s: (0, 0)),            # fused biases
        ],
        out_specs=pl.BlockSpec((None, OUT_ROWS, tile_s), lambda b, s: (b, 0, s)),
    )

    kernel = functools.partial(_roi_head_kernel, C=C, num_classes=nc)
    slab = pl.pallas_call(
        kernel,
        out_shape=jax.ShapeDtypeStruct((B, OUT_ROWS, S), jnp.float32),
        grid_spec=grid_spec,
        compiler_params=pltpu.CompilerParams(
            dimension_semantics=("parallel", "parallel"),
            vmem_limit_bytes=vmem_limit),
    )(x_bcs, w_all, b_all)
    return slab


def far3d_export_img_roi_forward(img_feats, params, *, stride=8.0, topk=16,
                                 num_classes=8, target_tile_s=4096):
    """Mirrors Far3D_export_img_roi.forward.

    img_feats: (B, C, H, W)  (PyTorch NCHW; B = batch * num_cams)
    returns (pred_depth, bbox_list, bbox2d_scores, valid_indices)
    """
    B, C, H, W = img_feats.shape
    S = H * W
    N = B * S
    # NCHW -> (B, C, S): pure reshape (no transpose / HBM round-trip); keep the
    # backbone's dtype (bf16 stays bf16) instead of inserting a convert pass.
    x_bcs = img_feats.reshape(B, C, S)
    if x_bcs.dtype not in (jnp.float32, jnp.bfloat16):
        x_bcs = x_bcs.astype(jnp.float32)

    slab = img_roi_head_pallas(x_bcs, params, num_classes,
                               target_tile_s=target_tile_s)
    slab = slab[:, :, :S]       # drop any ragged-tile garbage columns (keep!)

    # packed rows: 0:4 = sign-folded bbox reg (-l,-t,r,b), 4 = fused score, 5 = depth
    pred_depth = slab[:, 5, :].reshape(N, 1)
    scores_flat = slab[:, 4, :].reshape(N)

    # predict_by_feat: top-k proposals by fused 2D score (glue, not the hot path)
    # TODO(synk): for production-sized N (multi-cam stride-8 maps) emit per-tile
    #             partial top-k candidates from the kernel to shrink this sort.
    topk_scores, valid_indices = jax.lax.top_k(scores_flat, topk)

    # distance2bbox decode only on the k selected rows (cheap in XLA)
    pix = valid_indices % S
    row = pix // W
    col = pix % W
    px = (col.astype(jnp.float32) + 0.5) * stride
    py = (row.astype(jnp.float32) + 0.5) * stride
    b_idx = valid_indices // S
    reg_topk = slab[b_idx, :, pix][:, 0:4]                      # (topk, 4)
    pts4 = jnp.stack([px, py, px, py], axis=-1)                 # (topk, 4)
    bbox_topk = pts4 + reg_topk                                 # signs already folded in
    bbox_list = jnp.concatenate([bbox_topk, topk_scores[:, None]], axis=-1)  # (topk, 5)
    bbox2d_scores = topk_scores[:, None]                        # (topk, 1)

    return pred_depth, bbox_list, bbox2d_scores, valid_indices


def init_params(key, C, num_classes):
    ks = jax.random.split(key, 6)
    s = 1.0 / jnp.sqrt(jnp.float32(C))
    return {
        "w_stem": jax.random.normal(ks[0], (C, C), jnp.float32) * s,
        "b_stem": jnp.zeros((1, C), jnp.float32),
        "w_cls":  jax.random.normal(ks[1], (C, num_classes), jnp.float32) * s,
        "b_cls":  jnp.full((1, num_classes), -2.0, jnp.float32),   # bias prior
        "w_ctr":  jax.random.normal(ks[2], (C, 1), jnp.float32) * s,
        "b_ctr":  jnp.zeros((1, 1), jnp.float32),
        "w_reg":  jax.random.normal(ks[3], (C, 4), jnp.float32) * s,
        "b_reg":  jnp.zeros((1, 4), jnp.float32),
        "w_dep":  jax.random.normal(ks[4], (C, 1), jnp.float32) * s,
        "b_dep":  jnp.ones((1, 1), jnp.float32),
    }


if __name__ == "__main__":
    key = jax.random.PRNGKey(0)
    k_feat, k_param = jax.random.split(key)

    B, C, H, W = 2, 32, 16, 16          # B = batch * num_cams; N = B*H*W = 512
    num_classes = 8

    img_feats = jax.random.normal(k_feat, (B, C, H, W), jnp.float32)
    params = init_params(k_param, C, num_classes)

    fwd = jax.jit(functools.partial(far3d_export_img_roi_forward,
                                    params=params, stride=8.0, topk=16,
                                    num_classes=num_classes))
    outs = fwd(img_feats)
    jax.block_until_ready(outs)
    pred_depth, bbox_list, bbox2d_scores, valid_indices = outs

    assert pred_depth.shape == (B * H * W, 1)
    assert bbox_list.shape == (16, 5)
    assert bbox2d_scores.shape == (16, 1)
    assert valid_indices.shape == (16,)
    assert bool(jnp.all(jnp.isfinite(pred_depth)))
    assert bool(jnp.all(jnp.isfinite(bbox_list)))
    print("KERNEL_OK")
</pallas_src>

<mosaic_0001>
module attributes {stable_mosaic.version = 11 : i64} {
  func.func @_roi_head_kernel(%arg0: i32, %arg1: i32, %arg2: memref<1x32x256xf32, #tpu.memory_space<vmem>>, %arg3: memref<46x32xf32, #tpu.memory_space<vmem>>, %arg4: memref<46x1xf32, #tpu.memory_space<vmem>>, %arg5: memref<1x6x256xf32, #tpu.memory_space<vmem>>) attributes {dimension_semantics = [#tpu.dimension_semantics<parallel>, #tpu.dimension_semantics<parallel>], iteration_bounds = array<i64: 2, 1>, scalar_prefetch = 0 : i64, scratch_operands = 0 : i64, tpu.core_type = #tpu.core_type<tc>, window_params = [{transform_indices = @transform_0, window_bounds = array<i64: 1, 32, 256>}, {pipeline_mode = #tpu.pipeline_mode<synchronous>, transform_indices = @transform_1, window_bounds = array<i64: 46, 32>}, {pipeline_mode = #tpu.pipeline_mode<synchronous>, transform_indices = @transform_2, window_bounds = array<i64: 46, 1>}, {transform_indices = @transform_3, window_bounds = array<i64: 1, 6, 256>}]} {
    %c0 = arith.constant 0 : index
    %c0_0 = arith.constant 0 : index
    %c0_1 = arith.constant 0 : index
    %0 = vector.load %arg2[%c0, %c0_0, %c0_1] : memref<1x32x256xf32, #tpu.memory_space<vmem>>, vector<1x32x256xf32>
    %1 = vector.shape_cast %0 : vector<1x32x256xf32> to vector<32x256xf32>
    %c0_2 = arith.constant 0 : index
    %c0_3 = arith.constant 0 : index
    %2 = vector.load %arg3[%c0_2, %c0_3] : memref<46x32xf32, #tpu.memory_space<vmem>>, vector<32x32xf32>
    %c32 = arith.constant 32 : index
    %c0_4 = arith.constant 0 : index
    %3 = vector.load %arg3[%c32, %c0_4] : memref<46x32xf32, #tpu.memory_space<vmem>>, vector<14x32xf32>
    %c0_5 = arith.constant 0 : index
    %c0_6 = arith.constant 0 : index
    %4 = vector.load %arg4[%c0_5, %c0_6] : memref<46x1xf32, #tpu.memory_space<vmem>>, vector<32x1xf32>
    %c32_7 = arith.constant 32 : index
    %c0_8 = arith.constant 0 : index
    %5 = vector.load %arg4[%c32_7, %c0_8] : memref<46x1xf32, #tpu.memory_space<vmem>>, vector<14x1xf32>
    %cst = arith.constant dense<0.000000e+00> : vector<32x256xf32>
    %6 = tpu.matmul %2, %1, %cst {dimension_numbers = #tpu.dot_dimension_numbers<[1], [0], [0], [1], [0, 0, 1, 1], [], []>} : vector<32x32xf32>, vector<32x256xf32>, vector<32x256xf32> -> vector<32x256xf32>
    %7 = vector.broadcast %4 : vector<32x1xf32> to vector<32x256xf32>
    %8 = arith.addf %6, %7 : vector<32x256xf32>
    %cst_9 = arith.constant 0.000000e+00 : f32
    %9 = vector.broadcast %cst_9 : f32 to vector<32x256xf32>
    %10 = arith.maximumf %8, %9 : vector<32x256xf32>
    %cst_10 = arith.constant dense<0.000000e+00> : vector<14x256xf32>
    %11 = tpu.matmul %3, %10, %cst_10 {dimension_numbers = #tpu.dot_dimension_numbers<[1], [0], [0], [1], [0, 0, 1, 1], [], []>} : vector<14x32xf32>, vector<32x256xf32>, vector<14x256xf32> -> vector<14x256xf32>
    %12 = vector.broadcast %5 : vector<14x1xf32> to vector<14x256xf32>
    %13 = arith.addf %11, %12 : vector<14x256xf32>
    %14 = vector.extract_strided_slice %13 {offsets = [0, 0], sizes = [4, 256], strides = [1, 1]} : vector<14x256xf32> to vector<4x256xf32>
    %15 = vector.extract_strided_slice %13 {offsets = [4, 0], sizes = [1, 256], strides = [1, 1]} : vector<14x256xf32> to vector<1x256xf32>
    %16 = vector.extract_strided_slice %13 {offsets = [5, 0], sizes = [1, 256], strides = [1, 1]} : vector<14x256xf32> to vector<1x256xf32>
    %17 = vector.extract_strided_slice %13 {offsets = [6, 0], sizes = [8, 256], strides = [1, 1]} : vector<14x256xf32> to vector<8x256xf32>
    %cst_11 = arith.constant dense<0xFF800000> : vector<256xf32>
    %18 = vector.multi_reduction <maximumf>, %17, %cst_11 [0] : vector<8x256xf32> to vector<256xf32>
    %19 = vector.shape_cast %18 : vector<256xf32> to vector<1x256xf32>
    %20 = arith.negf %19 : vector<1x256xf32>
    %21 = math.exp %20 : vector<1x256xf32>
    %cst_12 = arith.constant 1.000000e+00 : f32
    %22 = vector.broadcast %cst_12 : f32 to vector<1x256xf32>
    %23 = arith.addf %22, %21 : vector<1x256xf32>
    %24 = arith.divf %22, %23 : vector<1x256xf32>
    %25 = arith.negf %16 : vector<1x256xf32>
    %26 = math.exp %25 : vector<1x256xf32>
    %cst_13 = arith.constant 1.000000e+00 : f32
    %27 = vector.broadcast %cst_13 : f32 to vector<1x256xf32>
    %28 = arith.addf %27, %26 : vector<1x256xf32>
    %29 = arith.divf %27, %28 : vector<1x256xf32>
    %30 = arith.mulf %24, %29 : vector<1x256xf32>
    %cst_14 = arith.constant 0.000000e+00 : f32
    %31 = vector.broadcast %cst_14 : f32 to vector<1x256xf32>
    %32 = arith.maximumf %15, %31 : vector<1x256xf32>
    %33 = tpu.concatenate %14, %30, %32 in 0 : vector<4x256xf32>, vector<1x256xf32>, vector<1x256xf32> -> vector<6x256xf32>
    %c0_15 = arith.constant 0 : index
    %c0_16 = arith.constant 0 : index
    %c0_17 = arith.constant 0 : index
    %34 = vector.load %arg5[%c0_15, %c0_16, %c0_17] : memref<1x6x256xf32, #tpu.memory_space<vmem>>, vector<1x6x256xf32>
    %35 = vector.shape_cast %34 : vector<1x6x256xf32> to vector<6x256xf32>
    %36 = vector.shape_cast %33 : vector<6x256xf32> to vector<1x6x256xf32>
    tpu.vector_store %arg5[%c0_15, %c0_16, %c0_17], %36 {strides = array<i32>} : memref<1x6x256xf32, #tpu.memory_space<vmem>>, vector<1x6x256xf32>,
    return
  }
  func.func @transform_0(%arg0: i32, %arg1: i32) -> (i32, i32, i32) {
    %c0_i32 = arith.constant 0 : i32
    %c0_i32_0 = arith.constant 0 : i32
    return %arg0, %c0_i32, %arg1 : i32, i32, i32
  }
  func.func @transform_1(%arg0: i32, %arg1: i32) -> (i32, i32) {
    %c0_i32 = arith.constant 0 : i32
    %c0_i32_0 = arith.constant 0 : i32
    %c0_i32_1 = arith.constant 0 : i32
    return %c0_i32, %c0_i32_0 : i32, i32
  }
  func.func @transform_2(%arg0: i32, %arg1: i32) -> (i32, i32) {
    %c0_i32 = arith.constant 0 : i32
    %c0_i32_0 = arith.constant 0 : i32
    %c0_i32_1 = arith.constant 0 : i32
    return %c0_i32, %c0_i32_0 : i32, i32
  }
  func.func @transform_3(%arg0: i32, %arg1: i32) -> (i32, i32, i32) {
    %c0_i32 = arith.constant 0 : i32
    %c0_i32_0 = arith.constant 0 : i32
    return %arg0, %c0_i32, %arg1 : i32, i32, i32
  }
}

</mosaic_0001>

<bundles_post_ra>
// kernel: far3d_export_img_roi_forward.1
= control target key start
LH: loop header
LB: loop body
LE: loop exit
PB: predicated region body
PF: predicated region fallthrough
CT: control target
= control target key end

     0   :  { %s721_s12 = smov 0   ;;  %s723_s13 = smov 0   ;;  %s818_s0 = inlined_call_operand.vmem [shape: f32[2,32,256], index: 0, kind: input, shape index: {}]   ;;  %s819_s1 = inlined_call_operand.vmem [shape: f32[46,32], index: 1, kind: input, shape index: {}]   ;;  %s820_s2 = inlined_call_operand.vmem [shape: f32[46,1], index: 2, kind: input, shape index: {}]   ;;  %s821_s3 = inlined_call_operand.vmem [shape: f32[2,6,256], index: 3, kind: output, shape index: {}]  }
   0x1   :  { %s725_s14 = smov 0  }
   0x2 LB: > { %s25_s15 = sadd.s32 1, %s693_s13  ;;  %p612_p0 = scmp.ge.s32.totalorder %s697_s14, 1  ;;  %s697_s14 = sphi %s725_s14, %s13_s14   ;;  %s693_s13 = sphi %s723_s13, %s823_s13   ;;  %s689_s12 = sphi %s721_s12, %s822_s12  }
   0x3   : > { %p27_p1 = scmp.ge.s32.totalorder %s25_s15, 2  ;;  %p158_p2 = scmp.lt.s32.totalorder %s697_s14, 3 }
   0x5   : > { %s825_s15 = smov (%p27_p1, %s25_s15), 0  ;;  %p159_p3 = pnand %p612_p0, %p158_p2 }
   0x6   : > { %p191_p4 = scmp.lt.s32.totalorder (!%p159_p3), %s689_s12, 1 }
   0x7   : > { %162 = sbr.rel (%p159_p3) target bundleno = 500 (0x1f4), region = 32 }
   0xc   : > { %v699_v0 = vmov 0.0   ;;  %v225_v1 = vld [vmem:[%s820_s2 + $0x8] sm:$0xff]  ;;  %s827_s12 = smov (!%p191_p4, %s689_s12), 1  ;;  %v700_v2 = vmov 0   ;;  %v227_v3 = vld [vmem:[%s820_s2 + $0x18] sm:$0xff]  ;;  %v224_v4 = vld [vmem:[%s820_s2] sm:$0xff] }
   0xd   : > { %327 = vmatprep.mubr.f32.mxu0 %v699_v0  ;;  %440 = vmatprep.mubr.f32.mxu1 %v699_v0  ;;  %s629_s20 = sshll.u32 %s827_s12, 6  ;;  %v226_v5 = vld [vmem:[%s820_s2 + $0x10] sm:$0xff]  ;;  %v229_v11 = vld [vmem:[%s820_s2 + $0x28] sm:$0x3f]  ;;  %v228_v13 = vld [vmem:[%s820_s2 + $0x20] sm:$0xff]  ;;  %vm250_vm0 = vcmask 261120  }
   0xe   : > { %658 = vset.pattern.permute.xlu1 %v700_v2  ;;  %657 = vset.pattern.permute.xlu0 %v700_v2  ;;  %s198_s25 = scalar_lea.vmem %s818_s0, %s629_s20  ;;  %v218_v16 = vld [vmem:[%s819_s1] sm:$0xff]  ;;  %v219_v17 = vld [vmem:[%s819_s1 + $0x8] sm:$0xff]  ;;  %v220_v18 = vld [vmem:[%s819_s1 + $0x10] sm:$0xff]  ;;  %vm453_vm1 = vcmask 1047558   ;;  %vm455_vm2 = vcmask 1045504   ;;  %s630_s21 = sshll.u32 %s827_s12, 4 }
   0xf   : > { %237 = vperm.xlu1 %658, %v225_v1   ;;  %247 = vperm.xlu0 %657, %v227_v3   ;;  %v217_v6 = vld [vmem:[%s198_s25 + $0x38] sm:$0xff]  ;;  %v216_v7 = vld [vmem:[%s198_s25 + $0x30] sm:$0xff]  ;;  %v215_v8 = vld [vmem:[%s198_s25 + $0x28] sm:$0xff]  ;;  %vm513_vm3 = vcmask 1043456   ;;  %vm516_vm4 = vcmask 1044480   ;;  %s208_s24 = scalar_lea.vmem %s821_s3, %s630_s21 }
  0x10   : > { %287 = vmatprep.subr.mxu0 %v217_v6  ;;  %v214_v9 = vld [vmem:[%s198_s25 + $0x20] sm:$0xff]  ;;  %v213_v10 = vld [vmem:[%s198_s25 + $0x18] sm:$0xff]  ;;  %v212_v12 = vld [vmem:[%s198_s25 + $0x10] sm:$0xff] }
  0x11   : > { %288 = vmatpush1.msra.mxu0 %v216_v7  ;;  %v211_v14 = vld [vmem:[%s198_s25 + $0x8] sm:$0xff]  ;;  %v210_v15 = vld [vmem:[%s198_s25] sm:$0xff]  ;;  %v221_v19 = vld [vmem:[%s819_s1 + $0x18] sm:$0xff] }
  0x12   : > { %289 = vmatprep.subr.mxu0 %v215_v8  ;;  %v222_v48 = vld [vmem:[%s819_s1 + $0x20] sm:$0xff]  ;;  %v223_v49 = vld [vmem:[%s819_s1 + $0x28] sm:$0x3f] }
  0x13   : > { %232 = vperm.xlu1 %658, %v224_v4   ;;  %242 = vperm.xlu0 %657, %v226_v5  }
  0x14   : > { %290 = vmatpush1.msra.mxu0 %v214_v9 }
  0x15   : > { %291 = vmatprep.subr.mxu0 %v213_v10 }
  0x16   : > { %292 = vmatpush1.msra.mxu0 %v212_v12 }
  0x17   : > { %367 = vperm.xlu1 %658, %v229_v11   ;;  %362 = vperm.xlu0 %657, %v228_v13  }
  0x18   : > { %293 = vmatprep.subr.mxu0 %v211_v14 }
  0x19   : > { %294 = vmatpush1.msra.mxu0 %v210_v15 }
  0x1a   : > { %617 = vmatmul.mubr.msk.f32.vlgmr.msra.gmra.mxu0 %vm250_vm0, %v218_v16 }
  0x1b   : > { %333 = vmatprep.mubr.f32.mxu0 %v699_v0 }
  0x1e   : > { %618 = vmatmul.mubr.msk.f32.gmra.mxu0 %vm250_vm0, %v219_v17 }
  0x1f   : > { %339 = vmatprep.mubr.f32.mxu0 %v699_v0 }
  0x22   : > { %619 = vmatmul.mubr.msk.f32.gmra.mxu0 %vm250_vm0, %v220_v18 }
  0x23   : > { %345 = vmatprep.mubr.f32.mxu0 %v699_v0 }
  0x26   : > { %620 = vmatmul.mubr.msk.f32.gmra.mxu0 %vm250_vm0, %v221_v19 }
  0x8a   : > { %v248_v24 = vpop.permute.xlu0 %247  ;;  %v238_v27 = vpop.permute.xlu1 %237 }
  0x8e   : > { %v243_v29 = vpop.permute.xlu0 %242  ;;  %v233_v35 = vpop.permute.xlu1 %232 }
  0x92   : > { %v363_v52 = vpop.permute.xlu0 %362  ;;  %v368_v55 = vpop.permute.xlu1 %367 }
  0xda   : > { %v329_v20 = vpop.f32.mrf.mxu0 }
  0xdb   : > { %v330_v42 = vadd.f32 %v329_v20, %v233_v35 }
  0xdc   : > { %v331_v21 = vpop.f32.mrf.mxu0 }
  0xdd   : > { %v332_v40 = vadd.f32 %v331_v21, %v233_v35  ;;  %v352_v47 = vmax.f32 %v330_v42, 0.0 }
  0xde   : > { %v335_v22 = vpop.f32.mrf.mxu0 }
  0xdf   : > { %v336_v38 = vadd.f32 %v335_v22, %v238_v27  ;;  %v353_v46 = vmax.f32 %v332_v40, 0.0 }
  0xe0   : > { %v337_v23 = vpop.f32.mrf.mxu0 }
  0xe1   : > { %v338_v36 = vadd.f32 %v337_v23, %v238_v27  ;;  %v354_v45 = vmax.f32 %v336_v38, 0.0 }
  0xe2   : > { %v341_v25 = vpop.f32.mrf.mxu0 }
  0xe3   : > { %v342_v34 = vadd.f32 %v341_v25, %v243_v29  ;;  %v355_v44 = vmax.f32 %v338_v36, 0.0 }
  0xe4   : > { %v343_v26 = vpop.f32.mrf.mxu0 }
  0xe5   : > { %v344_v32 = vadd.f32 %v343_v26, %v243_v29  ;;  %v356_v43 = vmax.f32 %v342_v34, 0.0 }
  0xe6   : > { %v347_v28 = vpop.f32.mrf.mxu0 }
  0xe7   : > { %v348_v30 = vadd.f32 %v347_v28, %v248_v24  ;;  %v357_v41 = vmax.f32 %v344_v32, 0.0 }
  0xe8   : > { %v349_v31 = vpop.f32.mrf.mxu0 }
  0xe9   : > { %v350_v33 = vadd.f32 %v349_v31, %v248_v24  ;;  %v358_v39 = vmax.f32 %v348_v30, 0.0 }
  0xeb   : > { %v359_v37 = vmax.f32 %v350_v33, 0.0 }
  0xed   : > { %400 = vmatprep.subr.mxu1 %v359_v37 }
  0xee   : > { %401 = vmatpush1.msra.mxu1 %v358_v39 }
  0xef   : > { %402 = vmatprep.subr.mxu1 %v357_v41 }
  0xf0   : > { %403 = vmatpush1.msra.mxu1 %v356_v43 }
  0xf1   : > { %404 = vmatprep.subr.mxu1 %v355_v44 }
  0xf2   : > { %405 = vmatpush1.msra.mxu1 %v354_v45 }
  0xf3   : > { %406 = vmatprep.subr.mxu1 %v353_v46 }
  0xf4   : > { %407 = vmatpush1.msra.mxu1 %v352_v47 }
  0xf5   : > { %621 = vmatmul.mubr.msk.f32.vlgmr.msra.gmra.mxu1 %vm250_vm0, %v222_v48 }
  0xf6   : > { %446 = vmatprep.mubr.f32.mxu1 %v699_v0 }
  0xf9   : > { %622 = vmatmul.mubr.msk.f32.gmra.mxu1 %vm250_vm0, %v223_v49 }
 0x1b5   : > { %v442_v50 = vpop.f32.mrf.mxu1 }
 0x1b6   : > { %v793_v53 = vadd.f32 %v442_v50, %v363_v52 }
 0x1b7   : > { %v444_v51 = vpop.f32.mrf.mxu1 }
 0x1b8   : > { %v795_v56 = vadd.f32 %v444_v51, %v363_v52  ;;  %v454_v60 = vsel %vm453_vm1, %v793_v53, -inf  ;;  %v625_v6 = vmul.f32 -1.442695, %v793_v53  ;;  %v499_v29 = vmax.f32 %v793_v53, 0.0 }
 0x1b9   : > { %v448_v54 = vpop.f32.mrf.mxu1 }
 0x1ba   : > { %v449_v57 = vadd.f32 %v448_v54, %v368_v55  ;;  %v464_v63 = vsel %vm453_vm1, %v795_v56, -inf  ;;  %v626_v8 = vmul.f32 -1.442695, %v795_v56  ;;  %659 = vpow2.f32 %v625_v6 }
 0x1bb   : > { %v450_v58 = vpop.f32.mrf.mxu1  ;;  %v500_v31 = vmax.f32 %v795_v56, 0.0  ;;  %v509_v35 = vrot.slane %v499_v29, 7 }
 0x1bc   : > { %v451_v59 = vadd.f32 %v450_v58, %v368_v55  ;;  %v456_v61 = vsel %vm455_vm2, %v449_v57, -inf  ;;  %661 = vpow2.f32 %v626_v8 }
 0x1bd   : > { %v457_v62 = vmax.f32 %v454_v60, %v456_v61  ;;  %v510_v37 = vrot.slane %v500_v31, 7 }
 0x1be   : > { %v465_v0 = vsel %vm455_vm2, %v451_v59, -inf }
 0x1bf   : > { %v466_v1 = vmax.f32 %v464_v63, %v465_v0  ;;  %v458_v2 = vrot.slane %v457_v62, 4 }
 0x1c1   : > { %v467_v3 = vrot.slane %v466_v1, 4  ;;  %v459_v4 = vmax.f32 %v457_v62, %v458_v2 }
 0x1c3   : > { %v468_v5 = vmax.f32 %v466_v1, %v467_v3  ;;  %v460_v7 = vrot.slane %v459_v4, 2 }
 0x1c5   : > { %v469_v9 = vrot.slane %v468_v5, 2  ;;  %v461_v10 = vmax.f32 %v459_v4, %v460_v7 }
 0x1c7   : > { %v470_v11 = vmax.f32 %v468_v5, %v469_v9  ;;  %v462_v12 = vrot.slane %v461_v10, 1  ;;  %v660_v18 = vpop.eup %659 }
 0x1c8   : > { %v491_v20 = vadd.f32 1.0, %v660_v18 }
 0x1c9   : > { %v471_v13 = vrot.slane %v470_v11, 1  ;;  %v463_v14 = vmax.f32 %v461_v10, %v462_v12  ;;  %v662_v19 = vpop.eup %661 }
 0x1ca   : > { %v492_v21 = vadd.f32 1.0, %v662_v19 }
 0x1cb   : > { %v472_v15 = vmax.f32 %v470_v11, %v471_v13  ;;  %v623_v16 = vmul.f32 -1.442695, %v463_v14 }
 0x1cd   : > { %v624_v17 = vmul.f32 -1.442695, %v472_v15  ;;  %663 = vpow2.f32 %v623_v16 }
 0x1cf   : > { %665 = vpow2.f32 %v624_v17 }
 0x1d0   : > { %667 = vrcp.f32 %v491_v20 }
 0x1d1   : > { %669 = vrcp.f32 %v492_v21 }
 0x1da   : > { %v664_v22 = vpop.eup %663 }
 0x1db   : > { %v479_v24 = vadd.f32 1.0, %v664_v22 }
 0x1dc   : > { %v666_v23 = vpop.eup %665 }
 0x1dd   : > { %v480_v25 = vadd.f32 1.0, %v666_v23  ;;  %671 = vrcp.f32 %v479_v24  ;;  %v668_v26 = vpop.eup %667 }
 0x1de   : > { %v670_v27 = vpop.eup %669 }
 0x1df   : > { %673 = vrcp.f32 %v480_v25 }
 0x1ea   : > { %v672_v28 = vpop.eup %671 }
 0x1eb   : > { %v497_v32 = vmul.f32 %v672_v28, %v668_v26 }
 0x1ec   : > { %v674_v30 = vpop.eup %673 }
 0x1ed   : > { %v498_v33 = vmul.f32 %v674_v30, %v670_v27  ;;  %v503_v34 = vrot.slane %v497_v32, 1 }
 0x1ef   : > { %v504_v36 = vrot.slane %v498_v33, 1  ;;  %v514_v38 = vsel %vm513_vm3, %v793_v53, %v503_v34 }
 0x1f0   : > { %v517_v39 = vsel %vm516_vm4, %v514_v38, %v509_v35 }
 0x1f1   : > { %v515_v40 = vsel %vm513_vm3, %v795_v56, %v504_v36  ;;  %519 = vst [vmem:[%s208_s24] sm:$0x3f] %v517_v39 }
 0x1f2   : > { %v518_v41 = vsel %vm516_vm4, %v515_v40, %v510_v37 }
 0x1f3   : > { %520 = vst [vmem:[%s208_s24 + $0x8] sm:$0x3f] %v518_v41 }
 0x1f4 PF: > { %s13_s14 = sadd.s32 1, %s697_s14   ;;  %s822_s12 = smov %s693_s13 }
 0x1f5   : > { %p10_p5 = scmp.ge.s32.totalorder %s13_s14, 4   ;;  %s823_s13 = smov %s825_s15 }
 0x1f7   :  { %12 = sbr.rel (!%p10_p5) target bundleno = 2 (0x2), region = 62 }

</bundles_post_ra>
